<compile_context>
chip_gen: v5e
topology: v5e:2x2
jax: 0.10.0
libtpu: 0.0.40
codegen_flags: <defaults>
</compile_context>

<pallas_src>
import functools

import jax
import jax.numpy as jnp
from jax.experimental import pallas as pl
from jax.experimental.pallas import tpu as pltpu


def _encoder_kernel(alphas_ref, x_ref, w1_ref, b1_ref, w2_ref, b2_ref, o_ref):
    """One row-tile of the fused Linear -> PReLU -> Linear -> PReLU pipeline."""
    a1 = alphas_ref[0]  # PReLU alpha #1 (scalar, SMEM)
    a2 = alphas_ref[1]  # PReLU alpha #2 (scalar, SMEM)

    # In-kernel cast to the bf16 compute dtype (VPU work, hidden under DMA).
    x = x_ref[...].astype(w1_ref.dtype)

    # Linear1: (tm, D_in) @ (D_in, H) with f32 accumulation on the MXU.
    h = jnp.dot(x, w1_ref[...], preferred_element_type=jnp.float32)
    h = h + b1_ref[...]
    # PReLU (f32, VPU; filler under the MXU/DMA critical path).
    h = jnp.where(h > 0, h, a1 * h)

    # Linear2: (tm, H) @ (H, O); re-cast h to the compute dtype for the MXU.
    y = jnp.dot(h.astype(w2_ref.dtype), w2_ref[...],
                preferred_element_type=jnp.float32)
    y = y + b2_ref[...]
    # PReLU
    y = jnp.where(y > 0, y, a2 * y)

    o_ref[...] = y.astype(o_ref.dtype)


def _round_up(x, m):
    return (x + m - 1) // m * m


def _pick_row_tile(M, D_in, H, O, tm_request):
    """Pick the row-tile size (static, trace-time Python ints)."""
    if M <= 1024:
        # Tiny inputs: one grid step covering everything (f32 blocks only need
        # sublane-multiple-of-8 rows).
        return _round_up(M, 8)

    lane = 128
    # Approximate VMEM bytes per tile row:
    #   2x double-buffered f32 x blocks (lane-padded) + 2x f32 out blocks
    #   + ~2.5 row-tiles of f32 temporaries for h / y.
    per_row = (2 * _round_up(D_in, lane) * 4
               + 2 * _round_up(O, lane) * 4
               + 2.5 * (_round_up(H, lane) + _round_up(O, lane)) * 4)
    budget = 24 * 1024 * 1024          # headroom under the 32 MiB scoped limit
    vmem_cap = max(256, (int(budget // per_row) // 256) * 256)

    tm = min(tm_request, vmem_cap)
    # v7x megacore: keep at least 2 grid steps when M is large so both
    # TensorCores get work (harmless extra step on single-TC v5e/v6e).
    tm = min(tm, max(256, _round_up(pl.cdiv(M, 2), 256)))
    return tm


@functools.partial(jax.jit,
                   static_argnames=("tm", "compute_dtype", "out_dtype"))
def encoder_forward(x, w1, b1, w2, b2, alpha1, alpha2, *, tm=4096,
                    compute_dtype=jnp.bfloat16, out_dtype=jnp.float32):
    """x: (B, T, D_in). Returns (B, T, O) in out_dtype (default float32)."""
    B, T, D_in = x.shape
    H = w1.shape[1]
    O = w2.shape[1]
    M = B * T

    tm_eff = _pick_row_tile(M, D_in, H, O, tm)
    grid = (pl.cdiv(M, tm_eff),)

    # Activation stays in its original dtype/layout (cast happens in-kernel);
    # weights go to the compute dtype (tiny, stays resident in VMEM); biases
    # stay f32 and are added after the f32 accumulation.
    x2d = x.reshape(M, D_in)
    w1c = w1.astype(compute_dtype)
    w2c = w2.astype(compute_dtype)
    b1_2d = b1.reshape(1, H).astype(jnp.float32)
    b2_2d = b2.reshape(1, O).astype(jnp.float32)
    alphas = jnp.stack([
        jnp.asarray(alpha1, jnp.float32).reshape(()),
        jnp.asarray(alpha2, jnp.float32).reshape(()),
    ])  # (2,) in SMEM

    out2d = pl.pallas_call(
        _encoder_kernel,
        out_shape=jax.ShapeDtypeStruct((M, O), out_dtype),
        grid_spec=pltpu.PrefetchScalarGridSpec(
            num_scalar_prefetch=0,
            grid=grid,
            in_specs=[
                # PReLU alphas -> scalar memory (single (2,) array).
                pl.BlockSpec(memory_space=pltpu.MemorySpace.SMEM),
                # activations: tile over rows, full feature width.
                pl.BlockSpec((tm_eff, D_in), lambda i: (i, 0)),
                # weights / biases: constant index_map -> resident in VMEM.
                pl.BlockSpec((D_in, H), lambda i: (0, 0)),
                pl.BlockSpec((1, H), lambda i: (0, 0)),
                pl.BlockSpec((H, O), lambda i: (0, 0)),
                pl.BlockSpec((1, O), lambda i: (0, 0)),
            ],
            out_specs=pl.BlockSpec((tm_eff, O), lambda i: (i, 0)),
        ),
        compiler_params=pltpu.CompilerParams(
            dimension_semantics=("parallel",),
            vmem_limit_bytes=32 * 1024 * 1024),
    )(alphas, x2d, w1c, b1_2d, w2c, b2_2d)

    return out2d.reshape(B, T, O)


def _reference_forward(x, w1, b1, w2, b2, alpha1, alpha2, compute_dtype=None):
    """Pure-JAX reference (mirrors PyTorch Linear + PReLU semantics).

    If compute_dtype is given, mimics the kernel's bf16 matmul operands with
    f32 accumulation (for a tight kernel-vs-reference check).
    """
    if compute_dtype is not None:
        xc = x.astype(compute_dtype)
        w1c = w1.astype(compute_dtype)
        w2c = w2.astype(compute_dtype)
    else:
        xc, w1c, w2c = x, w1, w2
    h = jnp.einsum("btd,dh->bth", xc, w1c,
                   preferred_element_type=jnp.float32) + b1
    h = jnp.where(h > 0, h, alpha1 * h)
    h2 = h.astype(compute_dtype) if compute_dtype is not None else h
    y = jnp.einsum("bth,ho->bto", h2, w2c,
                   preferred_element_type=jnp.float32) + b2
    y = jnp.where(y > 0, y, alpha2 * y)
    return y


if __name__ == "__main__":
    # Small shapes consistent with the module: (batch, T, d+1)
    B, T, D_IN = 2, 8, 33        # d = 32 context features + 1 mask channel
    HIDDEN, OUT = 128, 128

    key = jax.random.PRNGKey(0)
    kx, kw1, kb1, kw2, kb2 = jax.random.split(key, 5)

    x = jax.random.normal(kx, (B, T, D_IN), dtype=jnp.float32)

    # Deterministic parameter init (PyTorch Linear-style uniform bounds).
    bound1 = 1.0 / (D_IN ** 0.5)
    w1 = jax.random.uniform(kw1, (D_IN, HIDDEN), jnp.float32, -bound1, bound1)
    b1 = jax.random.uniform(kb1, (HIDDEN,), jnp.float32, -bound1, bound1)
    bound2 = 1.0 / (HIDDEN ** 0.5)
    w2 = jax.random.uniform(kw2, (HIDDEN, OUT), jnp.float32, -bound2, bound2)
    b2 = jax.random.uniform(kb2, (OUT,), jnp.float32, -bound2, bound2)

    alpha1 = jnp.float32(0.25)  # PyTorch PReLU default init (shared scalar)
    alpha2 = jnp.float32(0.25)

    out = encoder_forward(x, w1, b1, w2, b2, alpha1, alpha2)
    out = jax.block_until_ready(out)
    assert out.shape == (B, T, OUT)

    # Tight check against a reference using the same bf16 matmul operands.
    ref_bf16 = _reference_forward(x, w1, b1, w2, b2, alpha1, alpha2,
                                  compute_dtype=jnp.bfloat16)
    assert jnp.allclose(out, ref_bf16, atol=2e-3, rtol=2e-3), \
        "mismatch vs bf16-operand reference"

    # Semantic check against the full-f32 PyTorch-style reference
    # (looser tolerance because kernel matmul operands are bf16).
    ref_f32 = _reference_forward(x, w1, b1, w2, b2, alpha1, alpha2)
    assert jnp.allclose(out, ref_f32, atol=5e-2, rtol=5e-2), \
        "mismatch vs f32 reference"

    print("KERNEL_OK")
</pallas_src>

<mosaic_0001>
module attributes {stable_mosaic.version = 11 : i64} {
  func.func @_encoder_kernel(%arg0: i32, %arg1: memref<2xf32, #tpu.memory_space<smem>>, %arg2: memref<16x33xf32, #tpu.memory_space<vmem>>, %arg3: memref<33x128xbf16, #tpu.memory_space<vmem>>, %arg4: memref<1x128xf32, #tpu.memory_space<vmem>>, %arg5: memref<128x128xbf16, #tpu.memory_space<vmem>>, %arg6: memref<1x128xf32, #tpu.memory_space<vmem>>, %arg7: memref<16x128xf32, #tpu.memory_space<vmem>>) attributes {dimension_semantics = [#tpu.dimension_semantics<parallel>], iteration_bounds = array<i64: 1>, scalar_prefetch = 0 : i64, scratch_operands = 0 : i64, tpu.core_type = #tpu.core_type<tc>, window_params = [{transform_indices = @transform_0, window_bounds = array<i64: 2>}, {transform_indices = @transform_1, window_bounds = array<i64: 16, 33>}, {pipeline_mode = #tpu.pipeline_mode<synchronous>, transform_indices = @transform_2, window_bounds = array<i64: 33, 128>}, {pipeline_mode = #tpu.pipeline_mode<synchronous>, transform_indices = @transform_3, window_bounds = array<i64: 1, 128>}, {pipeline_mode = #tpu.pipeline_mode<synchronous>, transform_indices = @transform_4, window_bounds = array<i64: 128, 128>}, {pipeline_mode = #tpu.pipeline_mode<synchronous>, transform_indices = @transform_5, window_bounds = array<i64: 1, 128>}, {transform_indices = @transform_6, window_bounds = array<i64: 16, 128>}]} {
    %c0 = arith.constant 0 : index
    %0 = memref.load %arg1[%c0] : memref<2xf32, #tpu.memory_space<smem>>
    %c1 = arith.constant 1 : index
    %1 = memref.load %arg1[%c1] : memref<2xf32, #tpu.memory_space<smem>>
    %c0_0 = arith.constant 0 : index
    %c0_1 = arith.constant 0 : index
    %2 = vector.load %arg2[%c0_0, %c0_1] : memref<16x33xf32, #tpu.memory_space<vmem>>, vector<16x33xf32>
    %3 = arith.truncf %2 : vector<16x33xf32> to vector<16x33xbf16>
    %c0_2 = arith.constant 0 : index
    %c0_3 = arith.constant 0 : index
    %4 = vector.load %arg3[%c0_2, %c0_3] : memref<33x128xbf16, #tpu.memory_space<vmem>>, vector<33x128xbf16>
    %cst = arith.constant dense<0.000000e+00> : vector<16x128xf32>
    %5 = tpu.matmul %3, %4, %cst {dimension_numbers = #tpu.dot_dimension_numbers<[1], [0], [0], [1], [0, 0, 1, 1], [], []>} : vector<16x33xbf16>, vector<33x128xbf16>, vector<16x128xf32> -> vector<16x128xf32>
    %c0_4 = arith.constant 0 : index
    %c0_5 = arith.constant 0 : index
    %6 = vector.load %arg4[%c0_4, %c0_5] : memref<1x128xf32, #tpu.memory_space<vmem>>, vector<1x128xf32>
    %7 = vector.broadcast %6 : vector<1x128xf32> to vector<16x128xf32>
    %8 = arith.addf %5, %7 : vector<16x128xf32>
    %cst_6 = arith.constant 0.000000e+00 : f32
    %9 = vector.broadcast %cst_6 : f32 to vector<16x128xf32>
    %10 = arith.cmpf ogt, %8, %9 : vector<16x128xf32>
    %11 = vector.broadcast %0 : f32 to vector<16x128xf32>
    %12 = arith.mulf %11, %8 : vector<16x128xf32>
    %13 = arith.select %10, %8, %12 : vector<16x128xi1>, vector<16x128xf32>
    %14 = arith.truncf %13 : vector<16x128xf32> to vector<16x128xbf16>
    %c0_7 = arith.constant 0 : index
    %c0_8 = arith.constant 0 : index
    %15 = vector.load %arg5[%c0_7, %c0_8] : memref<128x128xbf16, #tpu.memory_space<vmem>>, vector<128x128xbf16>
    %cst_9 = arith.constant dense<0.000000e+00> : vector<16x128xf32>
    %16 = tpu.matmul %14, %15, %cst_9 {dimension_numbers = #tpu.dot_dimension_numbers<[1], [0], [0], [1], [0, 0, 1, 1], [], []>} : vector<16x128xbf16>, vector<128x128xbf16>, vector<16x128xf32> -> vector<16x128xf32>
    %c0_10 = arith.constant 0 : index
    %c0_11 = arith.constant 0 : index
    %17 = vector.load %arg6[%c0_10, %c0_11] : memref<1x128xf32, #tpu.memory_space<vmem>>, vector<1x128xf32>
    %18 = vector.broadcast %17 : vector<1x128xf32> to vector<16x128xf32>
    %19 = arith.addf %16, %18 : vector<16x128xf32>
    %cst_12 = arith.constant 0.000000e+00 : f32
    %20 = vector.broadcast %cst_12 : f32 to vector<16x128xf32>
    %21 = arith.cmpf ogt, %19, %20 : vector<16x128xf32>
    %22 = vector.broadcast %1 : f32 to vector<16x128xf32>
    %23 = arith.mulf %22, %19 : vector<16x128xf32>
    %24 = arith.select %21, %19, %23 : vector<16x128xi1>, vector<16x128xf32>
    %c0_13 = arith.constant 0 : index
    %c0_14 = arith.constant 0 : index
    %25 = vector.load %arg7[%c0_13, %c0_14] : memref<16x128xf32, #tpu.memory_space<vmem>>, vector<16x128xf32>
    tpu.vector_store %arg7[%c0_13, %c0_14], %24 {strides = array<i32>} : memref<16x128xf32, #tpu.memory_space<vmem>>, vector<16x128xf32>,
    return
  }
  func.func @transform_0(%arg0: i32) -> i32 {
    %c0_i32 = arith.constant 0 : i32
    %c0_i32_0 = arith.constant 0 : i32
    return %c0_i32 : i32
  }
  func.func @transform_1(%arg0: i32) -> (i32, i32) {
    %c0_i32 = arith.constant 0 : i32
    %c0_i32_0 = arith.constant 0 : i32
    return %arg0, %c0_i32 : i32, i32
  }
  func.func @transform_2(%arg0: i32) -> (i32, i32) {
    %c0_i32 = arith.constant 0 : i32
    %c0_i32_0 = arith.constant 0 : i32
    %c0_i32_1 = arith.constant 0 : i32
    return %c0_i32, %c0_i32_0 : i32, i32
  }
  func.func @transform_3(%arg0: i32) -> (i32, i32) {
    %c0_i32 = arith.constant 0 : i32
    %c0_i32_0 = arith.constant 0 : i32
    %c0_i32_1 = arith.constant 0 : i32
    return %c0_i32, %c0_i32_0 : i32, i32
  }
  func.func @transform_4(%arg0: i32) -> (i32, i32) {
    %c0_i32 = arith.constant 0 : i32
    %c0_i32_0 = arith.constant 0 : i32
    %c0_i32_1 = arith.constant 0 : i32
    return %c0_i32, %c0_i32_0 : i32, i32
  }
  func.func @transform_5(%arg0: i32) -> (i32, i32) {
    %c0_i32 = arith.constant 0 : i32
    %c0_i32_0 = arith.constant 0 : i32
    %c0_i32_1 = arith.constant 0 : i32
    return %c0_i32, %c0_i32_0 : i32, i32
  }
  func.func @transform_6(%arg0: i32) -> (i32, i32) {
    %c0_i32 = arith.constant 0 : i32
    %c0_i32_0 = arith.constant 0 : i32
    return %arg0, %c0_i32 : i32, i32
  }
}

</mosaic_0001>

<bundles_post_ra>
// kernel: encoder_forward.1
= control target key start
LH: loop header
LB: loop body
LE: loop exit
PB: predicated region body
PF: predicated region fallthrough
CT: control target
= control target key end

     0   :  { %11 = vsyncpa [#allocation4], 0  ;;  %s399_s0 = inlined_call_operand.vmem [shape: f32[2], index: 0, kind: input, shape index: {}]   ;;  %s400_s1 = inlined_call_operand.vmem [shape: f32[16,33], index: 1, kind: input, shape index: {}]   ;;  %s401_s2 = inlined_call_operand.vmem [shape: bf16[33,128], index: 2, kind: input, shape index: {}]   ;;  %s402_s3 = inlined_call_operand.vmem [shape: f32[1,128], index: 3, kind: input, shape index: {}]   ;;  %s403_s4 = inlined_call_operand.vmem [shape: bf16[128,128], index: 4, kind: input, shape index: {}]   ;;  %s404_s5 = inlined_call_operand.vmem [shape: f32[1,128], index: 5, kind: input, shape index: {}]   ;;  %s405_s6 = inlined_call_operand.hbm [shape: f32[16,128], index: 6, kind: output, shape index: {}]  }
   0x1   :  { %12 = vsyncpa [#allocation3], 0  ;;  %s18_s23 = sshll.u32 %s399_s0, 4  ;;  %s308_s24 = smov [#allocation2]   ;;  %s19_s23 = int_to_ptr.vmem [resolvable:$true] %s18_s23 }
   0x2   :  { %21 = dma.vmem_to_smem %s19_s23, 16, %s308_s24, [#allocation4]  }
   0x3   :  { %304 = dma.done.wait [#allocation4], 16  }
   0x4   :  { %305 = vsyncadd [#allocation4], 4294967280 }
   0x5   :  { %36 = sfence }
   0x6   :  { %v47_v0 = vld [vmem:[%s401_s2 + $0x10] sm:$0x1]  ;;  %vm71_vm0 = vcmask 1040384   ;;  %v260_v2 = vld [vmem:[%s403_s4 + $0x38] sm:$0xff]  ;;  %v309_v3 = vmov 0   ;;  %v252_v8 = vld [vmem:[%s401_s2 + $0x8] sm:$0xff] }
   0x7   :  { %v61_v1 = vunpack.c.l.b16 %v47_v0  ;;  %v73_v4 = vsel %vm71_vm0, 65535, %v309_v3  ;;  %167 = vmatpush.bf16.msra.mxu1 %v260_v2  ;;  %v259_v6 = vld [vmem:[%s403_s4 + $0x30] sm:$0xff]  ;;  %v258_v9 = vld [vmem:[%s403_s4 + $0x28] sm:$0xff]  ;;  %v251_v10 = vld [vmem:[%s401_s2] sm:$0xff]  ;;  %vm67_vm1 = vcmask 269312   ;;  %s38_s24 = sld [smem:[#allocation2]] }
   0x8   :  { %v40_v11 = vld [vmem:[%s400_s1] sm:$0xff]  ;;  %v41_v12 = vld [vmem:[%s400_s1 + $0x8] sm:$0xff]  ;;  %v256_v15 = vld [vmem:[%s403_s4 + $0x18] sm:$0xff]  ;;  %s196_s7 = sshll.u32 %s405_s6, 4  ;;  %s312_s8 = smov 8   ;;  %s197_s7 = int_to_ptr.hbm [resolvable:$true] %s196_s7 }
   0x9   :  { %v64_v5 = vpack.c.b16 %v61_v1, %v61_v1  ;;  %v257_v13 = vld [vmem:[%s403_s4 + $0x20] sm:$0xff]  ;;  %v42_v14 = vpack.c.bf16 %v41_v12, %v40_v11  ;;  %v255_v16 = vld [vmem:[%s403_s4 + $0x10] sm:$0xff]  ;;  %v254_v17 = vld [vmem:[%s403_s4 + $0x8] sm:$0xff] }
   0xa   :  { %v253_v18 = vld [vmem:[%s403_s4] sm:$0xff]  ;;  %s209_s4 = sld [smem:[#allocation2 + $0x1]] }
   0xb   :  { %v75_v7 = vand.u32 %v73_v4, %v64_v5  ;;  %168 = vmatpush.bf16.msra.mxu1 %v259_v6  ;;  %v266_v20 = vld [vmem:[%s402_s3] ss:$0 sm:$0xff]  ;;  %s310_s3 = smov [#allocation5]  }
   0xc   :  { %v267_v30 = vld [vmem:[%s404_s5] ss:$0 sm:$0xff]  ;;  %s194_s0 = sshll.u32 %s310_s3, 4  ;;  %s311_s5 = smov 128   ;;  %s195_s0 = int_to_ptr.vmem [resolvable:$true] %s194_s0 }
   0xd   :  { %82 = vmatpush.bf16.msra.mxu0 %v75_v7  ;;  %v93_v22 = vstv %s38_s24 }
   0xf   :  { %169 = vmatpush.bf16.msra.mxu1 %v258_v9 }
  0x10   :  { %v183_v32 = vstv %s209_s4 }
  0x11   :  { %83 = vmatpush.bf16.msra.mxu0 %v252_v8 }
  0x13   :  { %170 = vmatpush.bf16.msra.mxu1 %v257_v13 }
  0x15   :  { %84 = vmatpush.bf16.msra.mxu0 %v251_v10 }
  0x17   :  { %171 = vmatpush.bf16.msra.mxu1 %v256_v15 }
  0x18   :  { %218 = vmatmul.msk.bf16.vlgmr.msra.gmra.mxu0 %vm67_vm1, %v42_v14 }
  0x1b   :  { %172 = vmatpush.bf16.msra.mxu1 %v255_v16 }
  0x1f   :  { %173 = vmatpush.bf16.msra.mxu1 %v254_v17 }
  0x23   :  { %174 = vmatpush.bf16.msra.mxu1 %v253_v18 }
  0x95   :  { %v86_v19 = vpop.f32.mrf.mxu0 }
  0x96   :  { %v87_v21 = vadd.f32 %v266_v20, %v86_v19 }
  0x98   :  { %v94_v24 = vmul.f32 %v93_v22, %v87_v21  ;;  %vm91_vm2 = vcmp.gt.f32.partialorder %v87_v21, 0.0 }
  0x9a   :  { %v96_v27 = vsel %vm91_vm2, %v87_v21, %v94_v24 }
  0x9d   :  { %v88_v23 = vpop.f32.mrf.mxu0 }
  0x9e   :  { %v89_v25 = vadd.f32 %v266_v20, %v88_v23 }
  0xa0   :  { %v95_v26 = vmul.f32 %v93_v22, %v89_v25  ;;  %vm92_vm3 = vcmp.gt.f32.partialorder %v89_v25, 0.0 }
  0xa2   :  { %v97_v28 = vsel %vm92_vm3, %v89_v25, %v95_v26 }
  0xa3   :  { %v98_v29 = vpack.c.bf16 %v97_v28, %v96_v27 }
  0xa5   :  { %175 = vmatmul.bf16.vlgmr.msra.gmra.mxu1 %v98_v29 }
 0x122   :  { %v176_v31 = vpop.f32.mrf.mxu1 }
 0x123   :  { %v177_v33 = vadd.f32 %v267_v30, %v176_v31 }
 0x125   :  { %vm181_vm4 = vcmp.gt.f32.partialorder %v177_v33, 0.0  ;;  %v184_v34 = vmul.f32 %v183_v32, %v177_v33 }
 0x127   :  { %v186_v35 = vsel %vm181_vm4, %v177_v33, %v184_v34 }
 0x128   :  { %188 = vst [vmem:[#allocation5] sm:$0xff] %v186_v35 }
 0x12a   :  { %v178_v36 = vpop.f32.mrf.mxu1 }
 0x12b   :  { %v179_v37 = vadd.f32 %v267_v30, %v178_v36 }
 0x12d   :  { %vm182_vm5 = vcmp.gt.f32.partialorder %v179_v37, 0.0  ;;  %v185_v38 = vmul.f32 %v183_v32, %v179_v37 }
 0x12f   :  { %v187_v39 = vsel %vm182_vm5, %v179_v37, %v185_v38 }
 0x130   :  { %189 = vst [vmem:[#allocation5 + $0x8] sm:$0xff] %v187_v39 }
 0x131   :  { %202 = dma.vmem_to_hbm [thread:$0]  %s195_s0, 256, %s197_s7, [#allocation3], %s311_s5, %s311_s5, %s312_s8  }
 0x132   :  { %306 = dma.done.wait [#allocation3], 256  }
 0x133   :  { %307 = vsyncadd [#allocation3], 4294967040 }
 0x134   :  { %207 = vsyncpa [#allocation3], 1 }
 0x135   :  { %208 = vsyncpa [#allocation4], 1 }

</bundles_post_ra>
